<compile_context>
chip_gen: v7x
topology: tpu7x:2x2x1
jax: 0.10.0
libtpu: 0.0.40
codegen_flags: <defaults>
</compile_context>

<pallas_src>
import math

import jax
import jax.numpy as jnp
from jax import lax
from jax.experimental import pallas as pl
from jax.experimental.pallas import tpu as pltpu

# --- model hyper-parameters (small, consistent with the module) -------------
BATCH = 2
SEQ = 8
D_MODEL = 32
NUM_HEADS = 4
HEAD_DIM = D_MODEL // NUM_HEADS
QKV_PAD = 128            # 3*D_MODEL = 96 zero-padded to one full 128-lane row
ROWS = BATCH * SEQ       # 16 batch-stacked rows

# Row offsets inside the packed constant slab (all multiples of 8).
_R_WQKV = 0              # rows  0:32   (32, 128)  scaled+permuted+padded QKV weight
_R_BQKV = 32             # rows 32:33   ( 1, 128)  scaled+permuted+padded QKV bias
_R_MASK = 40             # rows 40:56   (16,  16)  block-diagonal additive mask
_R_WO = 56               # rows 56:88   (32,  32)  output projection weight (in, out)
_R_BO = 88               # rows 88:89   ( 1,  32)  output projection bias
_CONST_ROWS = 96


def mha_kernel(x_ref, c_ref, out_ref):
    """Whole problem in one invocation (no grid).

    x_ref   : (BATCH*SEQ, D_MODEL)  flattened activations
    c_ref   : (_CONST_ROWS, 128)    packed constants (see _R_* offsets)
    out_ref : (BATCH*SEQ, D_MODEL)
    """
    x = x_ref[...]

    wqkv = c_ref[_R_WQKV:_R_WQKV + D_MODEL, :]          # (32, 128)
    bqkv = c_ref[_R_BQKV:_R_BQKV + 1, :]                # (1, 128)
    mask = c_ref[_R_MASK:_R_MASK + ROWS, 0:ROWS]        # (16, 16) block-diag additive
    wo = c_ref[_R_WO:_R_WO + D_MODEL, 0:D_MODEL]        # (32, 32)
    bo = c_ref[_R_BO:_R_BO + 1, 0:D_MODEL]              # (1, 32)

    # One QKV projection for the whole batch: (16,32)@(32,128) -> (16,128).
    # Softmax scale is already folded into the Q columns / bias host-side.
    qkv = jnp.dot(x, wqkv, preferred_element_type=jnp.float32) + bqkv

    # Contract last dim of q with last dim of k — no explicit k.T transpose.
    dn = (((1,), (1,)), ((), ()))

    acc = jnp.zeros((ROWS, D_MODEL), jnp.float32)
    for h in range(NUM_HEADS):  # static, unrolled
        c = h * HEAD_DIM
        q = qkv[:, c:c + HEAD_DIM]                                  # (16, 8)
        k = qkv[:, D_MODEL + c:D_MODEL + c + HEAD_DIM]              # (16, 8)
        v = qkv[:, 2 * D_MODEL + c:2 * D_MODEL + c + HEAD_DIM]      # (16, 8)

        # (16, 16) scores for both batches at once; the block-diagonal mask
        # drives the cross-batch entries to ~exp(-1e9) == 0 under softmax,
        # which is numerically identical to per-batch attention.
        s = lax.dot_general(q, k, dn, preferred_element_type=jnp.float32)
        s = s + mask
        # numerically-stable softmax along last dim (matches F.softmax)
        s = s - jnp.max(s, axis=-1, keepdims=True)
        p = jnp.exp(s)
        p = p * pl.reciprocal(jnp.sum(p, axis=-1, keepdims=True), approx=True)

        o_h = jnp.dot(p, v, preferred_element_type=jnp.float32)     # (16, 8)
        # concat(heads) @ Wo == sum_h o_h @ Wo[h*hd:(h+1)*hd, :]
        # -> no concatenate / scratch relayout.
        acc = acc + jnp.dot(o_h, wo[c:c + HEAD_DIM, :],
                            preferred_element_type=jnp.float32)

    out_ref[...] = acc + bo  # single full (16, 32) store


def multi_head_attention(x, mask, wqkv_t, bqkv, wo_t, bo):
    """x: (B, S, D) f32, mask: (S, S) f32 additive mask.

    wqkv_t / wo_t are the PyTorch Linear weights already transposed to
    (in, out); this wrapper keeps the PyTorch parameter semantics and performs
    the layout transforms (column permutation, scale folding, padding, constant
    packing, block-diagonal mask) host-side.
    """
    B, S, D = x.shape
    assert (B, S, D) == (BATCH, SEQ, D_MODEL)

    # PyTorch per-head interleaved layout: old col = h*3*hd + part*hd + d
    # Kernel layout ([Q|K|V] slabs):       new col = part*D + h*hd + d
    perm = jnp.array(
        [
            h * 3 * HEAD_DIM + part * HEAD_DIM + d
            for part in range(3)
            for h in range(NUM_HEADS)
            for d in range(HEAD_DIM)
        ],
        dtype=jnp.int32,
    )
    wqkv_p = wqkv_t[:, perm]          # (D, 3D) permuted
    bqkv_p = bqkv[perm]               # (3D,)   permuted

    # Fold 1/sqrt(head_dim) into the Q slab (weight + bias).
    scale = 1.0 / math.sqrt(HEAD_DIM)
    col_scale = jnp.concatenate(
        [jnp.full((D,), scale, jnp.float32), jnp.ones((2 * D,), jnp.float32)]
    )
    wqkv_s = wqkv_p * col_scale[None, :]
    bqkv_s = bqkv_p * col_scale

    # Zero-pad projection N dim 96 -> 128 (unmasked lane-dense vregs downstream).
    pad = QKV_PAD - 3 * D_MODEL
    wqkv_pad = jnp.pad(wqkv_s, ((0, 0), (0, pad)))          # (32, 128)
    bqkv_pad = jnp.pad(bqkv_s, (0, pad))                     # (128,)

    # Block-diagonal additive mask: user's (S,S) mask inside each batch block,
    # -1e9 between batches (so one fused softmax == per-batch softmax).
    mask_big = jnp.full((ROWS, ROWS), -1e9, jnp.float32)
    for b in range(B):
        mask_big = mask_big.at[b * S:(b + 1) * S, b * S:(b + 1) * S].set(mask)

    # Pack all constants into one (96, 128) slab -> a single input DMA.
    consts = jnp.zeros((_CONST_ROWS, 128), jnp.float32)
    consts = consts.at[_R_WQKV:_R_WQKV + D_MODEL, :].set(wqkv_pad)
    consts = consts.at[_R_BQKV, :].set(bqkv_pad)
    consts = consts.at[_R_MASK:_R_MASK + ROWS, 0:ROWS].set(mask_big)
    consts = consts.at[_R_WO:_R_WO + D_MODEL, 0:D_MODEL].set(wo_t)
    consts = consts.at[_R_BO, 0:D_MODEL].set(bo)

    vmem = pl.BlockSpec(memory_space=pltpu.MemorySpace.VMEM)
    out = pl.pallas_call(
        mha_kernel,
        out_shape=jax.ShapeDtypeStruct((B * S, D), jnp.float32),
        in_specs=[vmem, vmem],
        out_specs=vmem,
    )(x.reshape(B * S, D), consts)
    return out.reshape(B, S, D)


def reference(x, mask, wqkv_t, bqkv, wo_t, bo):
    """Pure-JAX reference mirroring the PyTorch forward exactly (unpermuted weights)."""
    B, S, D = x.shape
    qkv = x @ wqkv_t + bqkv                                     # (B,S,3D)
    qkv = qkv.reshape(B, S, NUM_HEADS, 3 * HEAD_DIM)
    qkv = jnp.transpose(qkv, (0, 2, 1, 3))                      # (B,H,S,3hd)
    q, k, v = jnp.split(qkv, 3, axis=-1)
    scaled = jnp.einsum("bhqd,bhkd->bhqk", q, k) / math.sqrt(HEAD_DIM)
    scaled = scaled + mask                                      # (S,S) broadcast
    attn = jax.nn.softmax(scaled, axis=-1)
    vals = jnp.einsum("bhqk,bhkd->bhqd", attn, v)
    vals = jnp.transpose(vals, (0, 2, 1, 3)).reshape(B, S, D)
    return vals @ wo_t + bo


if __name__ == "__main__":
    key = jax.random.PRNGKey(0)
    kx, kw1, kb1, kw2, kb2 = jax.random.split(key, 5)

    # deterministic parameter init (PyTorch Linear shapes: W=(out,in), b=(out,))
    bound1 = 1.0 / math.sqrt(D_MODEL)
    w_qkv = jax.random.uniform(
        kw1, (3 * D_MODEL, D_MODEL), jnp.float32, -bound1, bound1
    )
    b_qkv = jax.random.uniform(kb1, (3 * D_MODEL,), jnp.float32, -bound1, bound1)
    w_o = jax.random.uniform(kw2, (D_MODEL, D_MODEL), jnp.float32, -bound1, bound1)
    b_o = jax.random.uniform(kb2, (D_MODEL,), jnp.float32, -bound1, bound1)

    # pass transposed weights (in, out) so the kernel does x @ W
    wqkv_t = w_qkv.T
    wo_t = w_o.T

    x = jax.random.normal(kx, (BATCH, SEQ, D_MODEL), jnp.float32)

    # additive causal mask (seq, seq): 0 on/below diagonal, large negative above
    neg = jnp.full((SEQ, SEQ), -1e9, jnp.float32)
    mask = jnp.where(jnp.tril(jnp.ones((SEQ, SEQ), bool)), 0.0, neg)

    out = multi_head_attention(x, mask, wqkv_t, b_qkv, wo_t, b_o)
    out = jax.block_until_ready(out)

    ref = reference(x, mask, wqkv_t, b_qkv, wo_t, b_o)
    assert out.shape == (BATCH, SEQ, D_MODEL)
    # tolerance 2e-3: approx (EUP vrcp) reciprocal in the softmax denominator
    # has ~1e-3-class relative error budget; everything else is exact f32.
    assert jnp.allclose(out, ref, atol=2e-3, rtol=2e-3), "mismatch vs reference"

    print("KERNEL_OK")
</pallas_src>

<mosaic_0001>
module attributes {stable_mosaic.version = 11 : i64} {
  func.func @mha_kernel(%arg0: memref<16x32xf32, #tpu.memory_space<vmem>>, %arg1: memref<96x128xf32, #tpu.memory_space<vmem>>, %arg2: memref<16x32xf32, #tpu.memory_space<vmem>>) attributes {dimension_semantics = [], scalar_prefetch = 0 : i64, scratch_operands = 0 : i64, tpu.core_type = #tpu.core_type<tc>} {
    %c0 = arith.constant 0 : index
    %c0_0 = arith.constant 0 : index
    %0 = vector.load %arg0[%c0, %c0_0] : memref<16x32xf32, #tpu.memory_space<vmem>>, vector<16x32xf32>
    %c0_1 = arith.constant 0 : index
    %c0_2 = arith.constant 0 : index
    %1 = vector.load %arg1[%c0_1, %c0_2] : memref<96x128xf32, #tpu.memory_space<vmem>>, vector<32x128xf32>
    %c32 = arith.constant 32 : index
    %c0_3 = arith.constant 0 : index
    %2 = vector.load %arg1[%c32, %c0_3] : memref<96x128xf32, #tpu.memory_space<vmem>>, vector<1x128xf32>
    %c40 = arith.constant 40 : index
    %c0_4 = arith.constant 0 : index
    %3 = vector.load %arg1[%c40, %c0_4] : memref<96x128xf32, #tpu.memory_space<vmem>>, vector<16x16xf32>
    %c56 = arith.constant 56 : index
    %c0_5 = arith.constant 0 : index
    %4 = vector.load %arg1[%c56, %c0_5] : memref<96x128xf32, #tpu.memory_space<vmem>>, vector<32x32xf32>
    %c88 = arith.constant 88 : index
    %c0_6 = arith.constant 0 : index
    %5 = vector.load %arg1[%c88, %c0_6] : memref<96x128xf32, #tpu.memory_space<vmem>>, vector<1x32xf32>
    %cst = arith.constant dense<0.000000e+00> : vector<16x128xf32>
    %6 = tpu.matmul %0, %1, %cst {dimension_numbers = #tpu.dot_dimension_numbers<[1], [0], [0], [1], [0, 0, 1, 1], [], []>} : vector<16x32xf32>, vector<32x128xf32>, vector<16x128xf32> -> vector<16x128xf32>
    %7 = vector.broadcast %2 : vector<1x128xf32> to vector<16x128xf32>
    %8 = arith.addf %6, %7 : vector<16x128xf32>
    %cst_7 = arith.constant 0.000000e+00 : f32
    %9 = vector.broadcast %cst_7 : f32 to vector<16x32xf32>
    %10 = vector.extract_strided_slice %8 {offsets = [0, 0], sizes = [16, 8], strides = [1, 1]} : vector<16x128xf32> to vector<16x8xf32>
    %11 = vector.extract_strided_slice %8 {offsets = [0, 32], sizes = [16, 8], strides = [1, 1]} : vector<16x128xf32> to vector<16x8xf32>
    %12 = vector.extract_strided_slice %8 {offsets = [0, 64], sizes = [16, 8], strides = [1, 1]} : vector<16x128xf32> to vector<16x8xf32>
    %cst_8 = arith.constant dense<0.000000e+00> : vector<16x16xf32>
    %13 = tpu.matmul %10, %11, %cst_8 {dimension_numbers = #tpu.dot_dimension_numbers<[1], [1], [0], [0], [0, 0, 1, 0], [], []>} : vector<16x8xf32>, vector<16x8xf32>, vector<16x16xf32> -> vector<16x16xf32>
    %14 = arith.addf %13, %3 : vector<16x16xf32>
    %cst_9 = arith.constant dense<0xFF800000> : vector<16xf32>
    %15 = vector.multi_reduction <maximumf>, %14, %cst_9 [1] : vector<16x16xf32> to vector<16xf32>
    %16 = vector.shape_cast %15 : vector<16xf32> to vector<16x1xf32>
    %17 = vector.broadcast %16 : vector<16x1xf32> to vector<16x16xf32>
    %18 = arith.subf %14, %17 : vector<16x16xf32>
    %19 = math.exp %18 : vector<16x16xf32>
    %cst_10 = arith.constant dense<0.000000e+00> : vector<16xf32>
    %20 = vector.multi_reduction <add>, %19, %cst_10 [1] : vector<16x16xf32> to vector<16xf32>
    %21 = vector.shape_cast %20 : vector<16xf32> to vector<16x1xf32>
    %22 = tpu.reciprocal %21 {approx = true} : vector<16x1xf32> -> vector<16x1xf32>
    %23 = vector.broadcast %22 : vector<16x1xf32> to vector<16x16xf32>
    %24 = arith.mulf %19, %23 : vector<16x16xf32>
    %cst_11 = arith.constant dense<0.000000e+00> : vector<16x8xf32>
    %25 = tpu.matmul %24, %12, %cst_11 {dimension_numbers = #tpu.dot_dimension_numbers<[1], [0], [0], [1], [0, 0, 1, 1], [], []>} : vector<16x16xf32>, vector<16x8xf32>, vector<16x8xf32> -> vector<16x8xf32>
    %26 = vector.extract_strided_slice %4 {offsets = [0, 0], sizes = [8, 32], strides = [1, 1]} : vector<32x32xf32> to vector<8x32xf32>
    %cst_12 = arith.constant dense<0.000000e+00> : vector<16x32xf32>
    %27 = tpu.matmul %25, %26, %cst_12 {dimension_numbers = #tpu.dot_dimension_numbers<[1], [0], [0], [1], [0, 0, 1, 1], [], []>} : vector<16x8xf32>, vector<8x32xf32>, vector<16x32xf32> -> vector<16x32xf32>
    %28 = arith.addf %9, %27 : vector<16x32xf32>
    %29 = vector.extract_strided_slice %8 {offsets = [0, 8], sizes = [16, 8], strides = [1, 1]} : vector<16x128xf32> to vector<16x8xf32>
    %30 = vector.extract_strided_slice %8 {offsets = [0, 40], sizes = [16, 8], strides = [1, 1]} : vector<16x128xf32> to vector<16x8xf32>
    %31 = vector.extract_strided_slice %8 {offsets = [0, 72], sizes = [16, 8], strides = [1, 1]} : vector<16x128xf32> to vector<16x8xf32>
    %cst_13 = arith.constant dense<0.000000e+00> : vector<16x16xf32>
    %32 = tpu.matmul %29, %30, %cst_13 {dimension_numbers = #tpu.dot_dimension_numbers<[1], [1], [0], [0], [0, 0, 1, 0], [], []>} : vector<16x8xf32>, vector<16x8xf32>, vector<16x16xf32> -> vector<16x16xf32>
    %33 = arith.addf %32, %3 : vector<16x16xf32>
    %cst_14 = arith.constant dense<0xFF800000> : vector<16xf32>
    %34 = vector.multi_reduction <maximumf>, %33, %cst_14 [1] : vector<16x16xf32> to vector<16xf32>
    %35 = vector.shape_cast %34 : vector<16xf32> to vector<16x1xf32>
    %36 = vector.broadcast %35 : vector<16x1xf32> to vector<16x16xf32>
    %37 = arith.subf %33, %36 : vector<16x16xf32>
    %38 = math.exp %37 : vector<16x16xf32>
    %cst_15 = arith.constant dense<0.000000e+00> : vector<16xf32>
    %39 = vector.multi_reduction <add>, %38, %cst_15 [1] : vector<16x16xf32> to vector<16xf32>
    %40 = vector.shape_cast %39 : vector<16xf32> to vector<16x1xf32>
    %41 = tpu.reciprocal %40 {approx = true} : vector<16x1xf32> -> vector<16x1xf32>
    %42 = vector.broadcast %41 : vector<16x1xf32> to vector<16x16xf32>
    %43 = arith.mulf %38, %42 : vector<16x16xf32>
    %cst_16 = arith.constant dense<0.000000e+00> : vector<16x8xf32>
    %44 = tpu.matmul %43, %31, %cst_16 {dimension_numbers = #tpu.dot_dimension_numbers<[1], [0], [0], [1], [0, 0, 1, 1], [], []>} : vector<16x16xf32>, vector<16x8xf32>, vector<16x8xf32> -> vector<16x8xf32>
    %45 = vector.extract_strided_slice %4 {offsets = [8, 0], sizes = [8, 32], strides = [1, 1]} : vector<32x32xf32> to vector<8x32xf32>
    %cst_17 = arith.constant dense<0.000000e+00> : vector<16x32xf32>
    %46 = tpu.matmul %44, %45, %cst_17 {dimension_numbers = #tpu.dot_dimension_numbers<[1], [0], [0], [1], [0, 0, 1, 1], [], []>} : vector<16x8xf32>, vector<8x32xf32>, vector<16x32xf32> -> vector<16x32xf32>
    %47 = arith.addf %28, %46 : vector<16x32xf32>
    %48 = vector.extract_strided_slice %8 {offsets = [0, 16], sizes = [16, 8], strides = [1, 1]} : vector<16x128xf32> to vector<16x8xf32>
    %49 = vector.extract_strided_slice %8 {offsets = [0, 48], sizes = [16, 8], strides = [1, 1]} : vector<16x128xf32> to vector<16x8xf32>
    %50 = vector.extract_strided_slice %8 {offsets = [0, 80], sizes = [16, 8], strides = [1, 1]} : vector<16x128xf32> to vector<16x8xf32>
    %cst_18 = arith.constant dense<0.000000e+00> : vector<16x16xf32>
    %51 = tpu.matmul %48, %49, %cst_18 {dimension_numbers = #tpu.dot_dimension_numbers<[1], [1], [0], [0], [0, 0, 1, 0], [], []>} : vector<16x8xf32>, vector<16x8xf32>, vector<16x16xf32> -> vector<16x16xf32>
    %52 = arith.addf %51, %3 : vector<16x16xf32>
    %cst_19 = arith.constant dense<0xFF800000> : vector<16xf32>
    %53 = vector.multi_reduction <maximumf>, %52, %cst_19 [1] : vector<16x16xf32> to vector<16xf32>
    %54 = vector.shape_cast %53 : vector<16xf32> to vector<16x1xf32>
    %55 = vector.broadcast %54 : vector<16x1xf32> to vector<16x16xf32>
    %56 = arith.subf %52, %55 : vector<16x16xf32>
    %57 = math.exp %56 : vector<16x16xf32>
    %cst_20 = arith.constant dense<0.000000e+00> : vector<16xf32>
    %58 = vector.multi_reduction <add>, %57, %cst_20 [1] : vector<16x16xf32> to vector<16xf32>
    %59 = vector.shape_cast %58 : vector<16xf32> to vector<16x1xf32>
    %60 = tpu.reciprocal %59 {approx = true} : vector<16x1xf32> -> vector<16x1xf32>
    %61 = vector.broadcast %60 : vector<16x1xf32> to vector<16x16xf32>
    %62 = arith.mulf %57, %61 : vector<16x16xf32>
    %cst_21 = arith.constant dense<0.000000e+00> : vector<16x8xf32>
    %63 = tpu.matmul %62, %50, %cst_21 {dimension_numbers = #tpu.dot_dimension_numbers<[1], [0], [0], [1], [0, 0, 1, 1], [], []>} : vector<16x16xf32>, vector<16x8xf32>, vector<16x8xf32> -> vector<16x8xf32>
    %64 = vector.extract_strided_slice %4 {offsets = [16, 0], sizes = [8, 32], strides = [1, 1]} : vector<32x32xf32> to vector<8x32xf32>
    %cst_22 = arith.constant dense<0.000000e+00> : vector<16x32xf32>
    %65 = tpu.matmul %63, %64, %cst_22 {dimension_numbers = #tpu.dot_dimension_numbers<[1], [0], [0], [1], [0, 0, 1, 1], [], []>} : vector<16x8xf32>, vector<8x32xf32>, vector<16x32xf32> -> vector<16x32xf32>
    %66 = arith.addf %47, %65 : vector<16x32xf32>
    %67 = vector.extract_strided_slice %8 {offsets = [0, 24], sizes = [16, 8], strides = [1, 1]} : vector<16x128xf32> to vector<16x8xf32>
    %68 = vector.extract_strided_slice %8 {offsets = [0, 56], sizes = [16, 8], strides = [1, 1]} : vector<16x128xf32> to vector<16x8xf32>
    %69 = vector.extract_strided_slice %8 {offsets = [0, 88], sizes = [16, 8], strides = [1, 1]} : vector<16x128xf32> to vector<16x8xf32>
    %cst_23 = arith.constant dense<0.000000e+00> : vector<16x16xf32>
    %70 = tpu.matmul %67, %68, %cst_23 {dimension_numbers = #tpu.dot_dimension_numbers<[1], [1], [0], [0], [0, 0, 1, 0], [], []>} : vector<16x8xf32>, vector<16x8xf32>, vector<16x16xf32> -> vector<16x16xf32>
    %71 = arith.addf %70, %3 : vector<16x16xf32>
    %cst_24 = arith.constant dense<0xFF800000> : vector<16xf32>
    %72 = vector.multi_reduction <maximumf>, %71, %cst_24 [1] : vector<16x16xf32> to vector<16xf32>
    %73 = vector.shape_cast %72 : vector<16xf32> to vector<16x1xf32>
    %74 = vector.broadcast %73 : vector<16x1xf32> to vector<16x16xf32>
    %75 = arith.subf %71, %74 : vector<16x16xf32>
    %76 = math.exp %75 : vector<16x16xf32>
    %cst_25 = arith.constant dense<0.000000e+00> : vector<16xf32>
    %77 = vector.multi_reduction <add>, %76, %cst_25 [1] : vector<16x16xf32> to vector<16xf32>
    %78 = vector.shape_cast %77 : vector<16xf32> to vector<16x1xf32>
    %79 = tpu.reciprocal %78 {approx = true} : vector<16x1xf32> -> vector<16x1xf32>
    %80 = vector.broadcast %79 : vector<16x1xf32> to vector<16x16xf32>
    %81 = arith.mulf %76, %80 : vector<16x16xf32>
    %cst_26 = arith.constant dense<0.000000e+00> : vector<16x8xf32>
    %82 = tpu.matmul %81, %69, %cst_26 {dimension_numbers = #tpu.dot_dimension_numbers<[1], [0], [0], [1], [0, 0, 1, 1], [], []>} : vector<16x16xf32>, vector<16x8xf32>, vector<16x8xf32> -> vector<16x8xf32>
    %83 = vector.extract_strided_slice %4 {offsets = [24, 0], sizes = [8, 32], strides = [1, 1]} : vector<32x32xf32> to vector<8x32xf32>
    %cst_27 = arith.constant dense<0.000000e+00> : vector<16x32xf32>
    %84 = tpu.matmul %82, %83, %cst_27 {dimension_numbers = #tpu.dot_dimension_numbers<[1], [0], [0], [1], [0, 0, 1, 1], [], []>} : vector<16x8xf32>, vector<8x32xf32>, vector<16x32xf32> -> vector<16x32xf32>
    %85 = arith.addf %66, %84 : vector<16x32xf32>
    %86 = vector.broadcast %5 : vector<1x32xf32> to vector<16x32xf32>
    %87 = arith.addf %85, %86 : vector<16x32xf32>
    %c0_28 = arith.constant 0 : index
    %c0_29 = arith.constant 0 : index
    %88 = vector.load %arg2[%c0_28, %c0_29] : memref<16x32xf32, #tpu.memory_space<vmem>>, vector<16x32xf32>
    tpu.vector_store %arg2[%c0_28, %c0_29], %87 {strides = array<i32>} : memref<16x32xf32, #tpu.memory_space<vmem>>, vector<16x32xf32>,
    return
  }
}

</mosaic_0001>

<bundles_post_ra>
// kernel: tpu_custom_call.1
= control target key start
LH: loop header
LB: loop body
LE: loop exit
PB: predicated region body
PF: predicated region fallthrough
CT: control target
= control target key end

     0   :  { %7 = vsyncpa [#allocation3], 0  ;;  %s1865_s0 = inlined_call_operand.hbm [shape: f32[16,32], index: 0, kind: input, shape index: {}]   ;;  %s1866_s1 = inlined_call_operand.hbm [shape: f32[96,128], index: 1, kind: input, shape index: {}]   ;;  %s1867_s2 = inlined_call_operand.hbm [shape: f32[16,32], index: 2, kind: output, shape index: {}]  }
   0x1   :  { %8 = vsyncpa [#allocation6], 0 }
   0x2   :  { %9 = vsyncpa [#allocation4], 0  ;;  %s1681_s9 = smov [#allocation2]   ;;  %s1609_s13 = scalar_lea.hbm %s1865_s0, 256 }
   0x3   :  { %s15_s10 = sshll.u32 %s1681_s9, 4  ;;  %p1610_p0 = scmp.ne.s32.totalorder %s1865_s0, %s1609_s13  ;;  %s16_s10 = int_to_ptr.vmem [resolvable:$true] %s15_s10 }
   0x4   :  { %p1613_p1 = scmp.lt.u32.totalorder %s1609_s13, %s1865_s0 }
   0x6   :  { %p1615_p2 = pnand %p1613_p1, %p1610_p0 }
   0x8   :  { %1618 = shalt.err (!%p1615_p2)
}
   0x9   :  { %s1619_s18 = scalar_lea.vmem %s16_s10, 256  ;;  %p1624_p4 = scmp.lt.s32.totalorder %s16_s10, %s16_s10 }
   0xa   :  { %p1620_p3 = scmp.ne.s32.totalorder %s16_s10, %s1619_s18  ;;  %p1625_p5 = scmp.lt.s32.totalorder %s1619_s18, %s1619_s18 }
   0xc   :  { %p1626_p6 = por %p1625_p5, %p1624_p4 }
   0xe   :  { %p1627_p7 = pnand %p1626_p6, %p1620_p3 }
  0x10   :  { %1630 = shalt.err (!%p1627_p7)
}
  0x11   :  { %s1682_s19 = smov 128   ;;  %s1683_s20 = smov 8  }
  0x12   :  { %21 = dma.hbm_to_vmem [thread:$0]  %s1865_s0, 256, %s16_s10, [#allocation3], %s1682_s19, %s1682_s19, %s1683_s20  }
  0x13   :  { %s1684_s23 = smov [#allocation5]   ;;  %s1631_s27 = scalar_lea.hbm %s1866_s1, 1536 }
  0x14   :  { %s27_s24 = sshll.u32 %s1684_s23, 4  ;;  %p1632_p8 = scmp.ne.s32.totalorder %s1866_s1, %s1631_s27  ;;  %s28_s24 = int_to_ptr.vmem [resolvable:$true] %s27_s24 }
  0x15   :  { %p1635_p9 = scmp.lt.u32.totalorder %s1631_s27, %s1866_s1 }
  0x17   :  { %p1637_p10 = pnand %p1635_p9, %p1632_p8 }
  0x19   :  { %1640 = shalt.err (!%p1637_p10)
}
  0x1a   :  { %s1641_s4 = scalar_lea.vmem %s28_s24, 1536  ;;  %p1646_p12 = scmp.lt.s32.totalorder %s28_s24, %s28_s24 }
  0x1b   :  { %p1642_p11 = scmp.ne.s32.totalorder %s28_s24, %s1641_s4  ;;  %p1647_p13 = scmp.lt.s32.totalorder %s1641_s4, %s1641_s4 }
  0x1d   :  { %p1648_p0 = por %p1647_p13, %p1646_p12 }
  0x1f   :  { %p1649_p1 = pnand %p1648_p0, %p1642_p11 }
  0x21   :  { %1652 = shalt.err (!%p1649_p1)
}
  0x22   :  { %33 = dma.hbm_to_vmem [thread:$0]  %s1866_s1, 1536, %s28_s24, [#allocation6], %s1682_s19, %s1682_s19, %s1683_s20  }
  0x23   :  { %1675 = dma.done.wait [#allocation3], 256  }
  0x24   :  { %1676 = vsyncadd [#allocation3], 4294967040 }
  0x25   :  { %1677 = dma.done.wait [#allocation6], 1536  }
  0x26   :  { %1678 = vsyncadd [#allocation6], 4294965760  ;;  %vm58_vm0 = vcmask 261120   ;;  %v42_v0 = vld [vmem:[#allocation5] sm:$0xff]  ;;  %v43_v1 = vld [vmem:[#allocation5 + $0x8] sm:$0xff]  ;;  %vm146_vm1 = vcmask 64512  }
  0x27   :  { %v44_v2 = vld [vmem:[#allocation5 + $0x10] sm:$0xff]  ;;  %v1467_v3 = vpack.c.bf16 %v43_v1, %v42_v0  ;;  %v45_v4 = vld [vmem:[#allocation5 + $0x18] sm:$0xff]  ;;  %v1294_v8 = vld [vmem:[#allocation5 + $0x20] ss:$0 sm:$0xff]  ;;  %s1685_s1 = smov 96   ;;  %vm230_vm3 = vcmask 130048  }
  0x28   :  { %v40_v5 = vld [vmem:[#allocation2] sm:$0xff]  ;;  %v1471_v6 = vpack.c.bf16 %v45_v4, %v44_v2  ;;  %v41_v7 = vld [vmem:[#allocation2 + $0x8] sm:$0xff]  ;;  %vm1757_vm2 = vmpackc.low %vm146_vm1, %vm146_vm1  ;;  %s1686_s6 = smov 64   ;;  %s1687_s7 = smov 88  }
  0x29   :  { %1388 = vmatprep.mubr.msk.f32.mxu0 %vm58_vm0, %v40_v5  ;;  %1468 = vmatprep.subr.bf16.mxu0 %v1467_v3  ;;  %v1767_v19 = vld [vmem:[#allocation5 + $0x30] sm:$0xff]  ;;  %v1769_v20 = vld [vmem:[#allocation5 + $0x28] sm:$0xff]  ;;  %s1688_s8 = smov 120   ;;  %s1689_s9 = smov 80  }
  0x2a   :  { %1470 = vmatpush3.bf16.msra.mxu0 %v1467_v3  ;;  %s1690_s10 = smov 112   ;;  %s1691_s11 = smov 56  }
  0x2b   :  { %1472 = vmatprep.subr.bf16.mxu0 %v1471_v6  ;;  %s1692_s12 = smov 72   ;;  %s1693_s13 = smov 104  }
  0x2c   :  { %s1694_s14 = smov 48   ;;  %s1695_s15 = smov 40  }
  0x2d   :  { %s1696_s16 = smov [#allocation7]  }
  0x2e   :  { %1474 = vmatpush3.bf16.msra.mxu0 %v1471_v6  ;;  %s1281_s17 = sshll.u32 %s1696_s16, 4  ;;  %s1282_s17 = int_to_ptr.vmem [resolvable:$true] %s1281_s17 }
  0x2f   :  { %s1653_s18 = scalar_lea.vmem %s1282_s17, 256  ;;  %p1658_p3 = scmp.lt.s32.totalorder %s1282_s17, %s1282_s17 }
  0x30   :  { %p1654_p2 = scmp.ne.s32.totalorder %s1282_s17, %s1653_s18  ;;  %p1659_p4 = scmp.lt.s32.totalorder %s1653_s18, %s1653_s18 }
  0x31   :  { %1389 = vmatmul.mubr.msk.f32.vlgmr.msra.gmra.mrb[0].mxu0 %vm58_vm0, %v41_v7 }
  0x32   :  { %p1660_p5 = por %p1659_p4, %p1658_p3 }
  0x34   :  { %p1661_p6 = pnand %p1660_p5, %p1654_p2 }
 0x104   :  { %v1390_v9 = vpop.f32.mrb[0].mxu0 }
 0x105   :  { %v1744_v10 = vadd.f32 %v1390_v9, %v1294_v8  ;;  %v131_v11 = vpop.f32.mrb[1].mxu0 }
 0x106   :  { %v1746_v12 = vadd.f32 %v1294_v8, %v131_v11 }
 0x108   :  { %1395 = vmatprep.mubr.msk.f32.mxu1 %vm146_vm1, %v1746_v12  ;;  %v1752_v13 = vpack.i.bf16 %v1744_v10, %v1746_v12 }
 0x10a   :  { %1538 = vrot.lane.b32.xlu0 %v1752_v13, %s1685_s1 }
 0x17c   :  { %v1539_v14 = vpop.permute.xlu0 %1538 }
 0x17d   :  { %v1541_v15 = vunpack.i.h.bf16 %v1539_v14  ;;  %v1540_v16 = vunpack.i.l.bf16 %v1539_v14 }
 0x17f   :  { %v1475_v18 = vpack.c.bf16 %v1541_v15, %v1540_v16 }
 0x181   :  { %1477 = vmatprep.subr.msk.bf16.mxu1 %vm1757_vm2, %v1475_v18 }
 0x182   :  { %1480 = vmatpush3.bf16.xpose.msk.msra.mxu1 %vm1757_vm2, %v1475_v18 }
 0x189   :  { %1396 = vmatmul.mubr.msk.f32.vlgmr.msra.gmra.mrb[0].mxu1 %vm146_vm1, %v1744_v10 }
 0x25c   :  { %v1397_v21 = vpop.f32.mrb[0].mxu1 }
 0x25d   :  { %v227_v22 = vadd.f32 %v1397_v21, %v1767_v19  ;;  %v221_v23 = vpop.f32.mrb[1].mxu1 }
 0x25e   :  { %v222_v24 = vadd.f32 %v221_v23, %v1769_v20 }
 0x25f   :  { %v234_v25 = vsel %vm230_vm3, %v227_v22, -inf }
 0x260   :  { %235 = vmax.xlane.f32.xlu1 %v234_v25  ;;  %v231_v26 = vsel %vm230_vm3, %v222_v24, -inf }
 0x261   :  { %232 = vmax.xlane.f32.xlu0 %v231_v26 }
 0x271   :  { %1543 = vrot.lane.b32.xlu1 %v1752_v13, %s1686_s6 }
 0x275   :  { %1548 = vrot.lane.b32.xlu1 %v1752_v13, %s1687_s7 }
 0x277   :  { %342 = vrot.lane.b32.xlu0 %v1744_v10, %s1688_s8 }
 0x2ed   :  { %v236_v27 = vpop.xlane.xlu1 %235 }
 0x2ee   :  { %v238_v28 = vsub.f32 %v227_v22, %v236_v27  ;;  %v233_v29 = vpop.xlane.xlu0 %232 }
 0x2ef   :  { %v237_v30 = vsub.f32 %v222_v24, %v233_v29 }
 0x2f0   :  { %v241_v31 = vmul.f32 1.442695, %v238_v28 }
 0x2f1   :  { %v239_v32 = vmul.f32 1.442695, %v237_v30  ;;  %v1544_v33 = vpop.permute.xlu1 %1543 }
 0x2f2   :  { %1577 = vpow2.f32 %v241_v31  ;;  %v1546_v34 = vunpack.i.h.bf16 %v1544_v33  ;;  %v1545_v35 = vunpack.i.l.bf16 %v1544_v33  ;;  %v343_v56 = vpop.permute.xlu0 %342 }
 0x2f3   :  { %1579 = vpow2.f32 %v239_v32 }
 0x2f4   :  { %v1481_v36 = vpack.c.bf16 %v1546_v34, %v1545_v35 }
 0x2f5   :  { %v1549_v37 = vpop.permute.xlu1 %1548 }
 0x2f6   :  { %v1551_v38 = vunpack.i.h.bf16 %v1549_v37  ;;  %v1550_v39 = vunpack.i.l.bf16 %v1549_v37  ;;  %1482 = vmatprep.subr.bf16.mxu1 %v1481_v36 }
 0x2f7   :  { %1484 = vmatpush3.bf16.msra.mxu1 %v1481_v36 }
 0x2f8   :  { %v1485_v40 = vpack.c.bf16 %v1551_v38, %v1550_v39 }
 0x2fa   :  { %1487 = vmatprep.subr.msk.bf16.mxu1 %vm1757_vm2, %v1485_v40 }
 0x2fc   :  { %v1578_v41 = vpop.eup %1577 }
 0x2fd   :  { %v246_v42 = vsel %vm230_vm3, %v1578_v41, 0.0  ;;  %v1580_v43 = vpop.eup %1579 }
 0x2fe   :  { %247 = vadd.xlane.f32.xlu1 %v246_v42  ;;  %v243_v44 = vsel %vm230_vm3, %v1580_v43, 0.0 }
 0x302   :  { %244 = vadd.xlane.f32.xlu1 %v243_v44 }
 0x313   :  { %340 = vrot.lane.b32.xlu1 %v1746_v12, %s1688_s8 }
 0x317   :  { %1553 = vrot.lane.b32.xlu1 %v1752_v13, %s1689_s9 }
 0x31b   :  { %702 = vrot.lane.b32.xlu1 %v1746_v12, %s1690_s10 }
 0x31f   :  { %704 = vrot.lane.b32.xlu1 %v1744_v10, %s1690_s10 }
 0x38b   :  { %v248_v45 = vpop.xlane.xlu1 %247 }
 0x38c   :  { %1581 = vrcp.f32 %v248_v45 }
 0x38f   :  { %v245_v46 = vpop.xlane.xlu1 %244 }
 0x390   :  { %1583 = vrcp.f32 %v245_v46 }
 0x393   :  { %v341_v47 = vpop.permute.xlu1 %340 }
 0x396   :  { %v1582_v49 = vpop.eup %1581 }
 0x397   :  { %v1554_v48 = vpop.permute.xlu1 %1553  ;;  %v252_v54 = vmul.f32 %v1582_v49, %v1578_v41 }
 0x398   :  { %v1556_v51 = vunpack.i.h.bf16 %v1554_v48  ;;  %v1555_v52 = vunpack.i.l.bf16 %v1554_v48  ;;  %v49_v48 = vld [vmem:[#allocation5 + $0x38] sm:$0xff] }
 0x39a   :  { %v1584_v50 = vpop.eup %1583  ;;  %v1495_v55 = vpack.c.bf16 %v1556_v51, %v1555_v52 }
 0x39b   :  { %v251_v53 = vmul.f32 %v1584_v50, %v1580_v43  ;;  %v703_v57 = vpop.permute.xlu1 %702 }
 0x39d   :  { %1402 = vmatprep.mubr.msk.f32.mxu1 %vm230_vm3, %v251_v53 }
 0x39e   :  { %1403 = vmatmul.mubr.msk.f32.vlgmr.msra.gmra.mrb[2].mxu1 %vm230_vm3, %v252_v54 }
 0x39f   :  { %1490 = vmatpush3.bf16.xpose.msk.msra.mxu1 %vm1757_vm2, %v1485_v40  ;;  %1409 = vmatprep.mubr.msk.f32.mxu1 %vm146_vm1, %v341_v47  ;;  %v705_v58 = vpop.permute.xlu1 %704  ;;  %v50_v47 = vld [vmem:[#allocation5 + $0x40] sm:$0xff] }
 0x3a0   :  { %1497 = vmatprep.subr.msk.bf16.mxu1 %vm1757_vm2, %v1495_v55 }
 0x3a6   :  { %1410 = vmatmul.mubr.msk.f32.vlgmr.msra.gmra.mrb[4].mxu1 %vm146_vm1, %v343_v56 }
 0x3a7   :  { %1500 = vmatpush3.bf16.xpose.msk.msra.mxu1 %vm1757_vm2, %v1495_v55  ;;  %1433 = vmatprep.mubr.msk.f32.mxu1 %vm146_vm1, %v703_v57 }
 0x3ae   :  { %1434 = vmatmul.mubr.msk.f32.vlgmr.msra.gmra.mrb[6].mxu1 %vm146_vm1, %v705_v58 }
 0x471   :  { %v1798_v59 = vpop.f32.mrb[2].mxu1 }
 0x472   :  { %v1800_v60 = vpop.f32.mrb[3].mxu1 }
 0x479   :  { %v1411_v61 = vpop.f32.mrb[4].mxu1 }
 0x47a   :  { %v428_v62 = vadd.f32 %v1411_v61, %v1767_v19  ;;  %v422_v63 = vpop.f32.mrb[5].mxu1 }
 0x47b   :  { %v423_v0 = vadd.f32 %v422_v63, %v1769_v20 }
 0x47c   :  { %v434_v1 = vsel %vm230_vm3, %v428_v62, -inf }
 0x47d   :  { %435 = vmax.xlane.f32.xlu0 %v434_v1  ;;  %v431_v2 = vsel %vm230_vm3, %v423_v0, -inf }
 0x47e   :  { %432 = vmax.xlane.f32.xlu1 %v431_v2 }
 0x481   :  { %v1435_v3 = vpop.f32.mrb[6].mxu1 }
 0x482   :  { %v784_v4 = vpop.f32.mrb[7].mxu1  ;;  %v790_v23 = vadd.f32 %v1435_v3, %v1767_v19 }
 0x483   :  { %v785_v21 = vadd.f32 %v784_v4, %v1769_v20 }
 0x484   :  { %v796_v24 = vsel %vm230_vm3, %v790_v23, -inf }
 0x485   :  { %v793_v22 = vsel %vm230_vm3, %v785_v21, -inf }
 0x50a   :  { %v436_v5 = vpop.xlane.xlu0 %435 }
 0x50b   :  { %v438_v6 = vsub.f32 %v428_v62, %v436_v5  ;;  %v433_v7 = vpop.xlane.xlu1 %432 }
 0x50c   :  { %v437_v8 = vsub.f32 %v423_v0, %v433_v7 }
 0x50d   :  { %v441_v9 = vmul.f32 1.442695, %v438_v6 }
 0x50e   :  { %v439_v11 = vmul.f32 1.442695, %v437_v8 }
 0x50f   :  { %1585 = vpow2.f32 %v441_v9 }
 0x510   :  { %1587 = vpow2.f32 %v439_v11 }
 0x519   :  { %v1586_v14 = vpop.eup %1585 }
 0x51a   :  { %v1588_v15 = vpop.eup %1587  ;;  %v446_v16 = vsel %vm230_vm3, %v1586_v14, 0.0 }
 0x51b   :  { %447 = vadd.xlane.f32.xlu0 %v446_v16  ;;  %v443_v18 = vsel %vm230_vm3, %v1588_v15, 0.0 }
 0x51c   :  { %444 = vadd.xlane.f32.xlu1 %v443_v18 }
 0x52d   :  { %1558 = vrot.lane.b32.xlu1 %v1752_v13, %s1691_s11 }
 0x531   :  { %1563 = vrot.lane.b32.xlu0 %v1752_v13, %s1692_s12  ;;  %985 = vrot.lane.b32.xlu1 %v1746_v12, %s1693_s13 }
 0x535   :  { %987 = vrot.lane.b32.xlu1 %v1744_v10, %s1693_s13 }
 0x550   :  { %794 = vmax.xlane.f32.xlu0 %v793_v22 }
 0x559   :  { %797 = vmax.xlane.f32.xlu1 %v796_v24  ;;  %v52_v24 = vld [vmem:[#allocation5 + $0x50] sm:$0xff] }
 0x56a   :  { %1568 = vrot.lane.b32.xlu1 %v1752_v13, %s1694_s14 }
 0x56e   :  { %1573 = vrot.lane.b32.xlu1 %v1752_v13, %s1695_s15 }
 0x5a8   :  { %v448_v25 = vpop.xlane.xlu0 %447 }
 0x5a9   :  { %1589 = vrcp.f32 %v448_v25  ;;  %v445_v12 = vpop.xlane.xlu1 %444 }
 0x5aa   :  { %1591 = vrcp.f32 %v445_v12 }
 0x5ac   :  { %v1564_v10 = vpop.permute.xlu0 %1563 }
 0x5ad   :  { %v1566_v26 = vunpack.i.h.bf16 %v1564_v10  ;;  %v1565_v27 = vunpack.i.l.bf16 %v1564_v10  ;;  %v1559_v28 = vpop.permute.xlu1 %1558 }
 0x5ae   :  { %v1561_v29 = vunpack.i.h.bf16 %v1559_v28  ;;  %v1560_v30 = vunpack.i.l.bf16 %v1559_v28 }
 0x5af   :  { %v1505_v31 = vpack.c.bf16 %v1566_v26, %v1565_v27 }
 0x5b0   :  { %v1491_v32 = vpack.c.bf16 %v1561_v29, %v1560_v30 }
 0x5b1   :  { %1507 = vmatprep.subr.msk.bf16.mxu1 %vm1757_vm2, %v1505_v31  ;;  %v986_v33 = vpop.permute.xlu1 %985 }
 0x5b2   :  { %1492 = vmatprep.subr.bf16.mxu0 %v1491_v32  ;;  %1510 = vmatpush3.bf16.xpose.msk.msra.mxu1 %vm1757_vm2, %v1505_v31  ;;  %v1329_v31 = vld [vmem:[#allocation5 + $0x58] ss:$0 sm:$0xff] }
 0x5b3   :  { %v1590_v13 = vpop.eup %1589  ;;  %1452 = vmatprep.mubr.msk.f32.mxu1 %vm146_vm1, %v986_v33  ;;  %1494 = vmatpush3.bf16.msra.mxu0 %v1491_v32 }
 0x5b4   :  { %v1592_v34 = vpop.eup %1591  ;;  %v452_v36 = vmul.f32 %v1590_v13, %v1586_v14  ;;  %1419 = vmatprep.subr.mxu0 %v50_v47 }
 0x5b5   :  { %v451_v35 = vmul.f32 %v1592_v34, %v1588_v15  ;;  %v988_v37 = vpop.permute.xlu1 %987 }
 0x5b7   :  { %1416 = vmatprep.mubr.msk.f32.mxu0 %vm230_vm3, %v451_v35 }
 0x5b8   :  { %1417 = vmatmul.mubr.msk.f32.vlgmr.msra.gmra.mrb[2].mxu0 %vm230_vm3, %v452_v36 }
 0x5b9   :  { %1453 = vmatmul.mubr.msk.f32.vlgmr.msra.gmra.mrb[8].mxu1 %vm146_vm1, %v988_v37  ;;  %1420 = vmatpush3.msra.mxu0 %v50_v47 }
 0x5ba   :  { %1424 = vmatprep.subr.mxu0 %v49_v48 }
 0x5dd   :  { %v795_v38 = vpop.xlane.xlu0 %794 }
 0x5de   :  { %v799_v39 = vsub.f32 %v785_v21, %v795_v38 }
 0x5e0   :  { %v801_v40 = vmul.f32 1.442695, %v799_v39 }
 0x5e2   :  { %1593 = vpow2.f32 %v801_v40 }
 0x5e6   :  { %v798_v17 = vpop.xlane.xlu1 %797 }
 0x5e7   :  { %v800_v41 = vsub.f32 %v790_v23, %v798_v17 }
 0x5e9   :  { %v803_v42 = vmul.f32 1.442695, %v800_v41 }
 0x5ea   :  { %v1569_v50 = vpop.permute.xlu1 %1568 }
 0x5eb   :  { %1595 = vpow2.f32 %v803_v42  ;;  %v1571_v52 = vunpack.i.h.bf16 %v1569_v50  ;;  %v1570_v53 = vunpack.i.l.bf16 %v1569_v50 }
 0x5ec   :  { %v1594_v43 = vpop.eup %1593 }
 0x5ed   :  { %v805_v44 = vsel %vm230_vm3, %v1594_v43, 0.0  ;;  %v1501_v58 = vpack.c.bf16 %v1571_v52, %v1570_v53 }
 0x5ee   :  { %806 = vadd.xlane.f32.xlu0 %v805_v44  ;;  %v1574_v1 = vpop.permute.xlu1 %1573 }
 0x5ef   :  { %v1576_v5 = vunpack.i.h.bf16 %v1574_v1  ;;  %v1575_v6 = vunpack.i.l.bf16 %v1574_v1 }
 0x5f5   :  { %v1596_v45 = vpop.eup %1595 }
 0x5f6   :  { %v808_v46 = vsel %vm230_vm3, %v1596_v45, 0.0 }
 0x5f7   :  { %809 = vadd.xlane.f32.xlu0 %v808_v46 }
 0x67b   :  { %v807_v49 = vpop.xlane.xlu0 %806 }
 0x67c   :  { %1597 = vrcp.f32 %v807_v49 }
 0x684   :  { %v810_v51 = vpop.xlane.xlu0 %809 }
 0x685   :  { %1599 = vrcp.f32 %v810_v51 }
 0x686   :  { %v1598_v0 = vpop.eup %1597 }
 0x687   :  { %v813_v4 = vmul.f32 %v1598_v0, %v1594_v43 }
 0x68b   :  { %v1418_v54 = vpop.f32.mrb[2].mxu0 }
 0x68c   :  { %v531_v55 = vpop.f32.mrb[3].mxu0  ;;  %v1454_v56 = vpop.f32.mrb[8].mxu1 }
 0x68d   :  { %1421 = vmatprep.mubr.msk.f32.mxu0 %vm146_vm1, %v531_v55  ;;  %v1067_v57 = vpop.f32.mrb[9].mxu1  ;;  %v1073_v62 = vadd.f32 %v1454_v56, %v1767_v19 }
 0x68e   :  { %v1068_v61 = vadd.f32 %v1067_v57, %v1769_v20  ;;  %1422 = vmatmul.mubr.msk.f32.vlgmr.msra.gmra.mrb[4].mxu0 %vm146_vm1, %v1418_v54  ;;  %v51_v20 = vld [vmem:[#allocation5 + $0x48] sm:$0xff] }
 0x68f   :  { %1425 = vmatpush3.msra.mxu0 %v49_v48  ;;  %1426 = vmatprep.mubr.msk.f32.mxu0 %vm146_vm1, %v1800_v60  ;;  %v1079_v2 = vsel %vm230_vm3, %v1073_v62, -inf  ;;  %v1600_v3 = vpop.eup %1599  ;;  %v1511_v60 = vpack.c.bf16 %v1576_v5, %v1575_v6 }
 0x690   :  { %1502 = vmatprep.subr.bf16.mxu0 %v1501_v58  ;;  %v1076_v63 = vsel %vm230_vm3, %v1068_v61, -inf  ;;  %v814_v19 = vmul.f32 %v1600_v3, %v1596_v45 }
 0x691   :  { %1077 = vmax.xlane.f32.xlu0 %v1076_v63 }
 0x695   :  { %1080 = vmax.xlane.f32.xlu0 %v1079_v2 }
 0x696   :  { %1427 = vmatmul.mubr.msk.f32.vlgmr.msra.gmra.mrb[4].mxu0 %vm146_vm1, %v1798_v59 }
 0x697   :  { %1504 = vmatpush3.bf16.msra.mxu0 %v1501_v58  ;;  %1440 = vmatprep.mubr.msk.f32.mxu0 %vm230_vm3, %v813_v4 }
 0x698   :  { %1443 = vmatprep.subr.mxu0 %v51_v20 }
 0x69a   :  { %1441 = vmatmul.mubr.msk.f32.vlgmr.msra.gmra.mrb[6].mxu0 %vm230_vm3, %v814_v19 }
 0x69b   :  { %1444 = vmatpush3.msra.mxu0 %v51_v20 }
 0x69c   :  { %1512 = vmatprep.subr.bf16.mxu0 %v1511_v60 }
 0x71e   :  { %v1078_v7 = vpop.xlane.xlu0 %1077 }
 0x71f   :  { %v1082_v8 = vsub.f32 %v1068_v61, %v1078_v7 }
 0x721   :  { %v1084_v9 = vmul.f32 1.442695, %v1082_v8 }
 0x722   :  { %v1081_v11 = vpop.xlane.xlu0 %1080 }
 0x723   :  { %1601 = vpow2.f32 %v1084_v9  ;;  %v1083_v14 = vsub.f32 %v1073_v62, %v1081_v11 }
 0x725   :  { %v1086_v15 = vmul.f32 1.442695, %v1083_v14 }
 0x727   :  { %1603 = vpow2.f32 %v1086_v15 }
 0x72d   :  { %v1602_v16 = vpop.eup %1601 }
 0x72e   :  { %v1088_v59 = vsel %vm230_vm3, %v1602_v16, 0.0 }
 0x72f   :  { %1089 = vadd.xlane.f32.xlu0 %v1088_v59 }
 0x731   :  { %v1604_v18 = vpop.eup %1603 }
 0x732   :  { %v1091_v21 = vsel %vm230_vm3, %v1604_v18, 0.0 }
 0x733   :  { %1092 = vadd.xlane.f32.xlu0 %v1091_v21 }
 0x76d   :  { %v1442_v22 = vpop.f32.mrb[6].mxu0 }
 0x76e   :  { %v893_v23 = vpop.f32.mrb[7].mxu0 }
 0x76f   :  { %1445 = vmatprep.mubr.msk.f32.mxu0 %vm146_vm1, %v893_v23 }
 0x770   :  { %1446 = vmatmul.mubr.msk.f32.vlgmr.msra.gmra.mrb[4].mxu0 %vm146_vm1, %v1442_v22 }
 0x771   :  { %1514 = vmatpush3.bf16.msra.mxu0 %v1511_v60 }
 0x772   :  { %1462 = vmatprep.subr.mxu0 %v52_v24 }
 0x7bc   :  { %v1090_v25 = vpop.xlane.xlu0 %1089 }
 0x7bd   :  { %1605 = vrcp.f32 %v1090_v25 }
 0x7c0   :  { %v1093_v12 = vpop.xlane.xlu0 %1092 }
 0x7c1   :  { %1607 = vrcp.f32 %v1093_v12 }
 0x7c7   :  { %v1606_v10 = vpop.eup %1605 }
 0x7c8   :  { %v1096_v26 = vmul.f32 %v1606_v10, %v1602_v16 }
 0x7ca   :  { %1459 = vmatprep.mubr.msk.f32.mxu0 %vm230_vm3, %v1096_v26 }
 0x7cb   :  { %v1608_v27 = vpop.eup %1607 }
 0x7cc   :  { %v1097_v28 = vmul.f32 %v1608_v27, %v1604_v18 }
 0x7ce   :  { %1460 = vmatmul.mubr.msk.f32.vlgmr.msra.gmra.mrb[8].mxu0 %vm230_vm3, %v1097_v28 }
 0x7cf   :  { %1463 = vmatpush3.msra.mxu0 %v52_v24 }
 0x8a1   :  { %v1461_v29 = vpop.f32.mrb[8].mxu0 }
 0x8a2   :  { %v1176_v30 = vpop.f32.mrb[9].mxu0 }
 0x8a3   :  { %1464 = vmatprep.mubr.msk.f32.mxu0 %vm146_vm1, %v1176_v30 }
 0x8a4   :  { %1465 = vmatmul.mubr.msk.f32.vlgmr.msra.gmra.mrb[4].mxu0 %vm146_vm1, %v1461_v29 }
 0x977   :  { %v1466_v32 = vpop.f32.mrb[4].mxu0 }
 0x978   :  { %v1273_v33 = vadd.f32 %v1466_v32, %v1329_v31  ;;  %v1257_v13 = vpop.f32.mrb[5].mxu0 }
 0x979   :  { %v1272_v34 = vadd.f32 %v1329_v31, %v1257_v13 }
 0x97a   :  { %1275 = vst.msk [vmem:[#allocation7 + $0x8] sm:$0xff] %vm58_vm0, %v1273_v33 }
 0x97b   :  { %1274 = vst.msk [vmem:[#allocation7] sm:$0xff] %vm58_vm0, %v1272_v34 }
 0x97c   :  { %1664 = shalt.err (!%p1661_p6)
}
 0x97d   :  { %s1665_s23 = scalar_lea.hbm %s1867_s2, 256 }
 0x97e   :  { %p1666_p7 = scmp.ne.s32.totalorder %s1867_s2, %s1665_s23  ;;  %p1669_p8 = scmp.lt.u32.totalorder %s1665_s23, %s1867_s2 }
 0x980   :  { %p1671_p9 = pnand %p1669_p8, %p1666_p7 }
 0x982   :  { %1674 = shalt.err (!%p1671_p9)
}
 0x983   :  { %1287 = dma.vmem_to_hbm [thread:$0]  %s1282_s17, 256, %s1867_s2, [#allocation4], %s1682_s19, %s1682_s19, %s1683_s20  }
 0x984   :  { %1679 = dma.done.wait [#allocation4], 256  }
 0x985   :  { %1680 = vsyncadd [#allocation4], 4294967040 }
 0x986   :  { %1291 = vsyncpa [#allocation3], 1 }
 0x987   :  { %1292 = vsyncpa [#allocation6], 1 }
 0x988   :  { %1293 = vsyncpa [#allocation4], 1 }

</bundles_post_ra>
